<compile_context>
chip_gen: v7x
topology: tpu7x:2x2x1
jax: 0.10.0
libtpu: 0.0.40
codegen_flags: <defaults>
</compile_context>

<pallas_src>
import jax
import jax.numpy as jnp
from jax.experimental import pallas as pl
from jax.experimental.pallas import tpu as pltpu


_TARGET_CHUNK_BYTES = 8 << 20   # ~8 MiB per DMA chunk
_MAX_CHUNKS = 4                 # small cap: enough to spread across DMA engines


def _make_dma_copy_kernel(chunk_starts, chunk_sizes):
    """Build a kernel that DMAs the given static row chunks HBM -> HBM."""
    n_chunks = len(chunk_starts)

    def kernel(emb_hbm, out_hbm, sems):
        copies = []
        # Start every chunk DMA first (they proceed concurrently), then wait.
        for c in range(n_chunks):
            cp = pltpu.make_async_copy(
                emb_hbm.at[pl.ds(chunk_starts[c], chunk_sizes[c]), :],
                out_hbm.at[pl.ds(chunk_starts[c], chunk_sizes[c]), :],
                sems.at[c],
            )
            cp.start()
            copies.append(cp)
        for cp in copies:
            cp.wait()

    return kernel


def abs_positional_embedding(emb_table, seq_len, *, n_chunks=None):
    """Return emb_table[arange(seq_len)]  ==  emb_table[:seq_len]  via Pallas.

    emb_table: (max_seq_len, dim)
    result:    (seq_len, dim)
    """
    max_seq_len, dim = emb_table.shape
    if seq_len <= 0:
        raise ValueError(f"seq_len must be positive, got {seq_len}")
    if seq_len > max_seq_len:
        # Mirror nn.Embedding's out-of-range error instead of returning garbage.
        raise ValueError(
            f"seq_len={seq_len} exceeds max_seq_len={max_seq_len} of the table")

    itemsize = jnp.dtype(emb_table.dtype).itemsize
    total_bytes = seq_len * dim * itemsize

    # Chunk count: 1 for small copies; a few byte-targeted chunks for big ones.
    if n_chunks is None:
        n_chunks = max(1, min(_MAX_CHUNKS, pl.cdiv(total_bytes, _TARGET_CHUNK_BYTES)))
    n_chunks = int(max(1, min(n_chunks, seq_len)))

    chunk_rows = pl.cdiv(seq_len, n_chunks)
    chunk_starts, chunk_sizes = [], []
    start = 0
    while start < seq_len:
        rows = min(chunk_rows, seq_len - start)
        chunk_starts.append(start)
        chunk_sizes.append(rows)
        start += rows
    n_chunks = len(chunk_starts)

    kernel = _make_dma_copy_kernel(tuple(chunk_starts), tuple(chunk_sizes))

    return pl.pallas_call(
        kernel,
        out_shape=jax.ShapeDtypeStruct((seq_len, dim), emb_table.dtype),
        in_specs=[pl.BlockSpec(memory_space=pl.ANY)],   # raw HBM ref, no auto-DMA
        out_specs=pl.BlockSpec(memory_space=pl.ANY),    # write directly to HBM
        scratch_shapes=[pltpu.SemaphoreType.DMA((n_chunks,))],
        cost_estimate=pl.CostEstimate(
            flops=0, transcendentals=0, bytes_accessed=2 * total_bytes),
    )(emb_table)


def absolute_positional_embedding_forward(x, emb_table, *, n_chunks=None):
    """Mirror of AbsolutePositionalEmbedding.forward: uses only x.shape[1]."""
    seq_len = x.shape[1]
    return abs_positional_embedding(emb_table, seq_len, n_chunks=n_chunks)


def _reference(x, emb_table):
    t = jnp.arange(x.shape[1])
    return jnp.take(emb_table, t, axis=0)


if __name__ == "__main__":
    key = jax.random.PRNGKey(0)
    kx, ke, ke2 = jax.random.split(key, 3)

    # Case 1: shapes consistent with the module — batch=2, seq=8, dim=32,
    # max_seq_len=64.  x's values are irrelevant (only its seq length is used).
    B, S, D = 2, 8, 32
    MAX_SEQ_LEN = 64
    x = jax.random.normal(kx, (B, S, D), dtype=jnp.float32)
    emb_table = jax.random.normal(ke, (MAX_SEQ_LEN, D), dtype=jnp.float32)

    out = absolute_positional_embedding_forward(x, emb_table)
    out = jax.block_until_ready(out)
    ref = _reference(x, emb_table)
    assert out.shape == (S, D), f"bad shape {out.shape}"
    assert jnp.array_equal(out, ref), "mismatch vs reference (case 1)"

    # Case 2: non-(8,128)-aligned dim, odd seq_len, multi-chunk DMA path.
    S2, D2, MAX2 = 37, 96, 128
    x2 = jnp.zeros((2, S2, D2), dtype=jnp.float32)
    emb_table2 = jax.random.normal(ke2, (MAX2, D2), dtype=jnp.float32)
    out2 = absolute_positional_embedding_forward(x2, emb_table2, n_chunks=3)
    out2 = jax.block_until_ready(out2)
    ref2 = _reference(x2, emb_table2)
    assert out2.shape == (S2, D2), f"bad shape {out2.shape}"
    assert jnp.array_equal(out2, ref2), "mismatch vs reference (case 2)"

    print("KERNEL_OK")
</pallas_src>

<mosaic_0001>
module attributes {stable_mosaic.version = 11 : i64} {
  func.func @kernel(%arg0: memref<64x32xf32, #tpu.memory_space<any>>, %arg1: memref<8x32xf32, #tpu.memory_space<any>>, %arg2: memref<1x!tpu.dma_semaphore, #tpu.memory_space<semaphore_mem>>) attributes {dimension_semantics = [], scalar_prefetch = 0 : i64, scratch_operands = 1 : i64, tpu.core_type = #tpu.core_type<tc>} {
    %c0_i32 = arith.constant 0 : i32
    %c0_i32_0 = arith.constant 0 : i32
    %c0_i32_1 = arith.constant 0 : i32
    %0 = tpu.memref_slice %arg0[%c0_i32_0, %c0_i32_1] : memref<64x32xf32, #tpu.memory_space<any>> -> memref<8x32xf32, #tpu.memory_space<any>>
    %c0_i32_2 = arith.constant 0 : i32
    %c0_i32_3 = arith.constant 0 : i32
    %1 = tpu.memref_slice %arg1[%c0_i32_2, %c0_i32_3] : memref<8x32xf32, #tpu.memory_space<any>> -> memref<8x32xf32, #tpu.memory_space<any>>
    %2 = tpu.memref_slice %arg2[%c0_i32] : memref<1x!tpu.dma_semaphore, #tpu.memory_space<semaphore_mem>> -> memref<1x!tpu.dma_semaphore, #tpu.memory_space<semaphore_mem>>
    %3 = tpu.memref_squeeze %2 : memref<1x!tpu.dma_semaphore, #tpu.memory_space<semaphore_mem>> -> memref<!tpu.dma_semaphore, #tpu.memory_space<semaphore_mem>>
    tpu.enqueue_dma source(%0 : memref<8x32xf32, #tpu.memory_space<any>>) target(%1 : memref<8x32xf32, #tpu.memory_space<any>>) target_semaphore(%3 : memref<!tpu.dma_semaphore, #tpu.memory_space<semaphore_mem>>)
    %c0_i32_4 = arith.constant 0 : i32
    %c0_i32_5 = arith.constant 0 : i32
    %c0_i32_6 = arith.constant 0 : i32
    %4 = tpu.memref_slice %arg0[%c0_i32_5, %c0_i32_6] : memref<64x32xf32, #tpu.memory_space<any>> -> memref<8x32xf32, #tpu.memory_space<any>>
    %c0_i32_7 = arith.constant 0 : i32
    %c0_i32_8 = arith.constant 0 : i32
    %5 = tpu.memref_slice %arg1[%c0_i32_7, %c0_i32_8] : memref<8x32xf32, #tpu.memory_space<any>> -> memref<8x32xf32, #tpu.memory_space<any>>
    %6 = tpu.memref_slice %arg2[%c0_i32_4] : memref<1x!tpu.dma_semaphore, #tpu.memory_space<semaphore_mem>> -> memref<1x!tpu.dma_semaphore, #tpu.memory_space<semaphore_mem>>
    %7 = tpu.memref_squeeze %6 : memref<1x!tpu.dma_semaphore, #tpu.memory_space<semaphore_mem>> -> memref<!tpu.dma_semaphore, #tpu.memory_space<semaphore_mem>>
    tpu.wait_dma2 semaphore(%7 : memref<!tpu.dma_semaphore, #tpu.memory_space<semaphore_mem>>) src(%4 : memref<8x32xf32, #tpu.memory_space<any>>) dst(%5 : memref<8x32xf32, #tpu.memory_space<any>>)
    return
  }
}

</mosaic_0001>

<bundles_post_ra>
// kernel: tpu_custom_call.1
= control target key start
LH: loop header
LB: loop body
LE: loop exit
PB: predicated region body
PF: predicated region fallthrough
CT: control target
= control target key end

     0   :  { %s76_s0 = inlined_call_operand.vmem [shape: f32[64,32], index: 0, kind: input, shape index: {}]   ;;  %s77_s1 = inlined_call_operand.hbm [shape: f32[8,32], index: 1, kind: output, shape index: {}]  }
   0x1   :  { %s13_s8 = sshll.u32 %s76_s0, 4  ;;  %s14_s8 = int_to_ptr.vmem [resolvable:$true] %s13_s8 }
   0x2   :  { %s27_s9 = scalar_lea.vmem %s14_s8, 128  ;;  %s31_s10 = scalar_lea.vmem %s14_s8, 1024 }
   0x3   :  { %p28_p0 = scmp.ne.s32.totalorder %s14_s8, %s27_s9  ;;  %p32_p1 = scmp.lt.s32.totalorder %s14_s8, %s14_s8 }
   0x4   :  { %p33_p2 = scmp.lt.s32.totalorder %s31_s10, %s27_s9 }
   0x6   :  { %p34_p3 = por %p33_p2, %p32_p1 }
   0x8   :  { %p35_p4 = pnand %p34_p3, %p28_p0 }
   0xa   :  { %38 = shalt.err (!%p35_p4)  }
   0xb   :  { %s39_s13 = scalar_lea.hbm %s77_s1, 128 }
   0xc   :  { %p40_p5 = scmp.ne.s32.totalorder %s77_s1, %s39_s13  ;;  %p43_p6 = scmp.lt.u32.totalorder %s39_s13, %s77_s1 }
   0xe   :  { %p45_p7 = pnand %p43_p6, %p40_p5 }
  0x10   :  { %48 = shalt.err (!%p45_p7)  }
  0x11   :  { %16 = dma.vmem_to_hbm [thread:$0]  %s14_s8, 128, %s77_s1, [#allocation2] }
  0x12   :  { %49 = dma.done.wait [#allocation2], 128 }
  0x13   :  { %50 = vsyncadd [#allocation2], 4294967168 }
  0x14   :  { %20 = vsyncmov [#allocation2] }
  0x17   :  { %s21_s19 = vpop.sfrf %20 }
  0x18   :  { %p26_p8 = scmp.ne.s32.totalorder %s21_s19, 0 }
  0x1a   :  { %25 = shalt.err (%p26_p8)  }

</bundles_post_ra>
